<compile_context>
chip_gen: v7x
topology: tpu7x:2x2x1
jax: 0.10.0
libtpu: 0.0.40
codegen_flags: <defaults>
</compile_context>

<pallas_src>
import functools

import jax
import jax.numpy as jnp
from jax.experimental import pallas as pl
from jax.experimental.pallas import tpu as pltpu

_LANE = 128
_SUBLANE = 8
_TK_TARGET = 1024       # K-tile width target when K-tiling is needed
_TM_CAP = 1024          # diminishing returns beyond ~512-1024 rows


def _round_up(x, m):
    return (x + m - 1) // m * m


def _vmem_budget():
    """Generation-aware VMEM budget: (tile budget, explicit scoped limit)."""
    cap = None
    try:
        cap = getattr(pltpu.get_tpu_info(), "vmem_capacity_bytes", None)
    except Exception:  # pragma: no cover - query unavailable
        cap = None
    if not cap:
        cap = 64 << 20  # conservative fallback (v7x per-core size)
    return int(cap) // 2, (int(cap) * 3) // 4


def _pick_tk(n, stream_cols, itemsize, budget):
    """Contraction (adj-column) tile. Prefer tk == n (operands DMA'd once);
    K-tile only when n is large or the streamed x/h would eat the budget."""
    if n <= 4096 and n * stream_cols * itemsize <= budget // 4:
        return n
    start = min(_TK_TARGET, (n // _LANE) * _LANE)
    for tk in range(start, 0, -_LANE):
        if n % tk == 0:
            return tk
    return n  # no 128-multiple divisor; fall back to the full width


def _pick_tm(n, tk, adj_itemsize, compute_itemsize, fout_p, out_itemsize,
             acc_cols, fixed_bytes, adj_buffers, budget):
    """Largest adj row tile whose streamed adj/out buffers + accumulator +
    resident operands fit the per-core budget."""
    per_row = (adj_buffers * tk * adj_itemsize        # adj tile(s), native dtype
               + tk * compute_itemsize                # in-kernel cast temp
               + 2 * fout_p * out_itemsize            # double-buffered out tile
               + acc_cols * 4)                        # f32 accumulator scratch
    avail = max(budget - fixed_bytes, 1 << 20)
    tm = avail // per_row
    tm = max(1, min(tm, _TM_CAP, n))
    if tm < n:
        tm = max(_SUBLANE, (tm // _SUBLANE) * _SUBLANE)
    return tm


def _two_mm_kernel(adj_ref, x_ref, w_ref, out_ref, acc_ref, *, compute_dtype):
    # out_tile = (adj_tile @ x) @ W, accumulated over adj-column tiles.
    k = pl.program_id(1)

    @pl.when(k == 0)
    def _():
        acc_ref[...] = jnp.zeros_like(acc_ref)

    # Cast the adjacency tile in-kernel (streamed from HBM in native dtype).
    a = adj_ref[...].astype(compute_dtype)
    acc_ref[...] += jnp.dot(a, x_ref[...], preferred_element_type=jnp.float32)

    @pl.when(k == pl.num_programs(1) - 1)
    def _():
        out_ref[...] = jnp.dot(
            acc_ref[...].astype(compute_dtype), w_ref[...],
            preferred_element_type=jnp.float32,
        ).astype(out_ref.dtype)


def _one_mm_kernel(adj_ref, h_ref, out_ref, acc_ref, *, compute_dtype):
    # out_tile = adj_tile @ h, accumulated over adj-column tiles (h hoisted).
    k = pl.program_id(1)

    @pl.when(k == 0)
    def _():
        acc_ref[...] = jnp.zeros_like(acc_ref)

    a = adj_ref[...].astype(compute_dtype)
    acc_ref[...] += jnp.dot(a, h_ref[...], preferred_element_type=jnp.float32)

    @pl.when(k == pl.num_programs(1) - 1)
    def _():
        out_ref[...] = acc_ref[...].astype(out_ref.dtype)


def graph_conv(x, adj, weight, *, compute_dtype=None, block_rows=None,
               block_cols=None, adj_buffers=2, out_dtype=None):
    """GraphConv forward: adj @ (x @ weight.T).

    x:      (N, Fin)
    adj:    (N, N)          -- streamed in its native dtype, cast in-kernel
    weight: (Fout, Fin)     -- PyTorch nn.Linear layout (bias=False)
    compute_dtype: MXU input dtype; defaults to x.dtype (PyTorch-matching).
                   Pass jnp.bfloat16 for full-rate MXU / half the stream bytes.
    """
    n, fin = x.shape
    fout = weight.shape[0]
    out_dtype = out_dtype or x.dtype
    compute_dtype = compute_dtype or x.dtype

    itemsize = jnp.dtype(compute_dtype).itemsize
    out_itemsize = jnp.dtype(out_dtype).itemsize
    adj_itemsize = jnp.dtype(adj.dtype).itemsize

    budget, vmem_limit = _vmem_budget()

    # Lane-dense, exact zero padding of the feature dims.
    fin_p = _round_up(fin, _LANE)
    fout_p = _round_up(fout, _LANE)

    w_t = weight.T.astype(compute_dtype)                      # (Fin, Fout)
    if fout_p != fout:
        w_t = jnp.pad(w_t, ((0, 0), (0, fout_p - fout)))

    two_mm = fin_p < fout_p
    if two_mm:
        # (adj @ x) @ W : the dominant N^2 contraction multiplies fin_p.
        x_c = x.astype(compute_dtype)
        if fin_p != fin:
            x_c = jnp.pad(x_c, ((0, 0), (0, fin_p - fin)))
            w_t = jnp.pad(w_t, ((0, fin_p - fin), (0, 0)))
        stream, stream_cols, acc_cols = x_c, fin_p, fin_p
        resident = (w_t,)
        resident_bytes = fin_p * fout_p * itemsize            # Buffered(1)
        kernel = functools.partial(_two_mm_kernel, compute_dtype=compute_dtype)
        mm_flops = 2 * n * n * fin_p + 2 * n * fin_p * fout_p
    else:
        # Hoist the Linear: one tiny XLA matmul, kernel only streams adj @ h.
        h = jnp.dot(x.astype(compute_dtype), w_t,
                    preferred_element_type=jnp.float32).astype(compute_dtype)
        stream, stream_cols, acc_cols = h, fout_p, fout_p
        resident = ()
        resident_bytes = 0
        kernel = functools.partial(_one_mm_kernel, compute_dtype=compute_dtype)
        mm_flops = 2 * n * n * fout_p

    # --- tiling -------------------------------------------------------------
    if block_cols is None:
        block_cols = _pick_tk(n, stream_cols, itemsize, budget)
    tk = min(block_cols, n)
    if tk != n and n % tk != 0:
        raise ValueError(f"block_cols={tk} must divide N={n} (or equal N).")
    n_k = pl.cdiv(n, tk)
    stream_bufs = 1 if n_k == 1 else 2

    fixed_bytes = resident_bytes + tk * stream_cols * itemsize * stream_bufs
    if block_rows is None:
        block_rows = _pick_tm(n, tk, adj_itemsize, itemsize, fout_p,
                              out_itemsize, acc_cols, fixed_bytes,
                              adj_buffers, budget)
    tm = min(block_rows, n)
    grid = (pl.cdiv(n, tm), n_k)

    # --- specs ---------------------------------------------------------------
    adj_spec = pl.BlockSpec((tm, tk), lambda i, k: (i, k),
                            pipeline_mode=pl.Buffered(adj_buffers))
    stream_spec = pl.BlockSpec((tk, stream_cols), lambda i, k: (k, 0),
                               pipeline_mode=pl.Buffered(stream_bufs))
    in_specs = [adj_spec, stream_spec]
    if two_mm:
        # W is fully resident: constant index_map, single buffer.
        in_specs.append(pl.BlockSpec((fin_p, fout_p), lambda i, k: (0, 0),
                                     pipeline_mode=pl.Buffered(1)))
    out_spec = pl.BlockSpec((tm, fout_p), lambda i, k: (i, 0))

    bytes_accessed = (n * n * adj_itemsize
                      + n * stream_cols * itemsize
                      + resident_bytes
                      + n * fout_p * out_itemsize)
    cost = pl.CostEstimate(flops=int(mm_flops), transcendentals=0,
                           bytes_accessed=int(bytes_accessed))

    out_padded = pl.pallas_call(
        kernel,
        out_shape=jax.ShapeDtypeStruct((n, fout_p), out_dtype),
        grid_spec=pltpu.PrefetchScalarGridSpec(
            num_scalar_prefetch=0,
            grid=grid,
            in_specs=in_specs,
            out_specs=out_spec,
            scratch_shapes=[pltpu.VMEM((tm, acc_cols), jnp.float32)],
        ),
        compiler_params=pltpu.CompilerParams(
            # Independent row tiles shard across v7x's two TensorCores;
            # the k (reduction) axis is innermost and "arbitrary".
            dimension_semantics=("parallel", "arbitrary"),
            vmem_limit_bytes=vmem_limit,
        ),
        cost_estimate=cost,
    )(adj, stream, *resident)

    return out_padded[:, :fout] if fout_p != fout else out_padded


if __name__ == "__main__":
    key = jax.random.PRNGKey(0)
    k1x, k1a, k1w, k2x, k2a, k2w, k3x, k3a, k3w = jax.random.split(key, 9)

    # ---- Test 1: fin_p < fout_p -> (adj@x)@W path, bf16 compute with
    #      in-kernel cast of the f32 adjacency, multi-row-tile grid. ----
    n1, fin1, fout1 = 256, 64, 256
    x1 = jax.random.normal(k1x, (n1, fin1), dtype=jnp.float32)
    adj1 = jax.random.uniform(k1a, (n1, n1), dtype=jnp.float32)
    w1 = jax.random.normal(k1w, (fout1, fin1), dtype=jnp.float32) / jnp.sqrt(fin1)
    out1 = graph_conv(x1, adj1, w1, compute_dtype=jnp.bfloat16, block_rows=128)
    out1 = jax.block_until_ready(out1)
    ref1 = adj1 @ (x1 @ w1.T)
    assert out1.shape == (n1, fout1)
    rel1 = float(jnp.max(jnp.abs(out1 - ref1)) / jnp.max(jnp.abs(ref1)))
    assert rel1 < 3e-2, f"bf16 path rel err too large: {rel1}"

    # ---- Test 2: fin_p >= fout_p -> hoisted h, adj @ h, f32, single step. ----
    n2, fin2, fout2 = 64, 64, 32
    x2 = jax.random.normal(k2x, (n2, fin2), dtype=jnp.float32)
    adj2 = jax.random.uniform(k2a, (n2, n2), dtype=jnp.float32)
    w2 = jax.random.normal(k2w, (fout2, fin2), dtype=jnp.float32) / jnp.sqrt(fin2)
    out2 = graph_conv(x2, adj2, w2)   # compute_dtype defaults to f32
    out2 = jax.block_until_ready(out2)
    ref2 = adj2 @ (x2 @ w2.T)
    assert out2.shape == (n2, fout2)
    rel2 = float(jnp.max(jnp.abs(out2 - ref2)) / jnp.max(jnp.abs(ref2)))
    assert rel2 < 1e-3, f"f32 path rel err too large: {rel2}"

    # ---- Test 3: forced K-tiling (adj-column grid axis + f32 accumulator). ----
    n3, fin3, fout3 = 256, 64, 32
    x3 = jax.random.normal(k3x, (n3, fin3), dtype=jnp.float32)
    adj3 = jax.random.uniform(k3a, (n3, n3), dtype=jnp.float32)
    w3 = jax.random.normal(k3w, (fout3, fin3), dtype=jnp.float32) / jnp.sqrt(fin3)
    out3 = graph_conv(x3, adj3, w3, block_rows=64, block_cols=128)
    out3 = jax.block_until_ready(out3)
    ref3 = adj3 @ (x3 @ w3.T)
    assert out3.shape == (n3, fout3)
    rel3 = float(jnp.max(jnp.abs(out3 - ref3)) / jnp.max(jnp.abs(ref3)))
    assert rel3 < 1e-3, f"K-tiled path rel err too large: {rel3}"

    print("KERNEL_OK")
</pallas_src>

<mosaic_0001>
module attributes {stable_mosaic.version = 11 : i64} {
  func.func @_two_mm_kernel(%arg0: i32, %arg1: i32, %arg2: memref<128x256xf32, #tpu.memory_space<vmem>>, %arg3: memref<256x128xbf16, #tpu.memory_space<vmem>>, %arg4: memref<128x256xbf16, #tpu.memory_space<vmem>>, %arg5: memref<128x256xf32, #tpu.memory_space<vmem>>, %arg6: memref<128x128xf32, #tpu.memory_space<vmem>>) attributes {dimension_semantics = [#tpu.dimension_semantics<parallel>, #tpu.dimension_semantics<arbitrary>], iteration_bounds = array<i64: 2, 1>, scalar_prefetch = 0 : i64, scratch_operands = 1 : i64, tpu.core_type = #tpu.core_type<tc>, window_params = [{pipeline_mode = #tpu.pipeline_mode<double_buffered>, transform_indices = @transform_0, window_bounds = array<i64: 128, 256>}, {pipeline_mode = #tpu.pipeline_mode<synchronous>, transform_indices = @transform_1, window_bounds = array<i64: 256, 128>}, {pipeline_mode = #tpu.pipeline_mode<synchronous>, transform_indices = @transform_2, window_bounds = array<i64: 128, 256>}, {transform_indices = @transform_3, window_bounds = array<i64: 128, 256>}]} {
    %c0_i32 = arith.constant 0 : i32
    %0 = arith.cmpi eq, %arg1, %c0_i32 : i32
    %1 = arith.extui %0 : i1 to i32
    %c0_i32_0 = arith.constant 0 : i32
    %2 = arith.cmpi ne, %1, %c0_i32_0 : i32
    scf.if %2 {
      %cst_10 = arith.constant 0.000000e+00 : f32
      %13 = vector.broadcast %cst_10 : f32 to vector<128x128xf32>
      %c0_11 = arith.constant 0 : index
      %c0_12 = arith.constant 0 : index
      %14 = vector.load %arg6[%c0_11, %c0_12] : memref<128x128xf32, #tpu.memory_space<vmem>>, vector<128x128xf32>
      tpu.vector_store %arg6[%c0_11, %c0_12], %13 {strides = array<i32>} : memref<128x128xf32, #tpu.memory_space<vmem>>, vector<128x128xf32>,
    } else {
    }
    %c0 = arith.constant 0 : index
    %c0_1 = arith.constant 0 : index
    %3 = vector.load %arg2[%c0, %c0_1] : memref<128x256xf32, #tpu.memory_space<vmem>>, vector<128x256xf32>
    %4 = arith.truncf %3 : vector<128x256xf32> to vector<128x256xbf16>
    %c0_2 = arith.constant 0 : index
    %c0_3 = arith.constant 0 : index
    %5 = vector.load %arg6[%c0_2, %c0_3] : memref<128x128xf32, #tpu.memory_space<vmem>>, vector<128x128xf32>
    %c0_4 = arith.constant 0 : index
    %c0_5 = arith.constant 0 : index
    %6 = vector.load %arg3[%c0_4, %c0_5] : memref<256x128xbf16, #tpu.memory_space<vmem>>, vector<256x128xbf16>
    %cst = arith.constant dense<0.000000e+00> : vector<128x128xf32>
    %7 = tpu.matmul %4, %6, %cst {dimension_numbers = #tpu.dot_dimension_numbers<[1], [0], [0], [1], [0, 0, 1, 1], [], []>} : vector<128x256xbf16>, vector<256x128xbf16>, vector<128x128xf32> -> vector<128x128xf32>
    %8 = arith.addf %5, %7 : vector<128x128xf32>
    %c0_6 = arith.constant 0 : index
    %c0_7 = arith.constant 0 : index
    %9 = vector.load %arg6[%c0_6, %c0_7] : memref<128x128xf32, #tpu.memory_space<vmem>>, vector<128x128xf32>
    tpu.vector_store %arg6[%c0_6, %c0_7], %8 {strides = array<i32>} : memref<128x128xf32, #tpu.memory_space<vmem>>, vector<128x128xf32>,
    %c0_i32_8 = arith.constant 0 : i32
    %10 = arith.cmpi eq, %arg1, %c0_i32_8 : i32
    %11 = arith.extui %10 : i1 to i32
    %c0_i32_9 = arith.constant 0 : i32
    %12 = arith.cmpi ne, %11, %c0_i32_9 : i32
    scf.if %12 {
      %c0_10 = arith.constant 0 : index
      %c0_11 = arith.constant 0 : index
      %13 = vector.load %arg6[%c0_10, %c0_11] : memref<128x128xf32, #tpu.memory_space<vmem>>, vector<128x128xf32>
      %14 = arith.truncf %13 : vector<128x128xf32> to vector<128x128xbf16>
      %c0_12 = arith.constant 0 : index
      %c0_13 = arith.constant 0 : index
      %15 = vector.load %arg4[%c0_12, %c0_13] : memref<128x256xbf16, #tpu.memory_space<vmem>>, vector<128x256xbf16>
      %cst_14 = arith.constant dense<0.000000e+00> : vector<128x256xf32>
      %16 = tpu.matmul %14, %15, %cst_14 {dimension_numbers = #tpu.dot_dimension_numbers<[1], [0], [0], [1], [0, 0, 1, 1], [], []>} : vector<128x128xbf16>, vector<128x256xbf16>, vector<128x256xf32> -> vector<128x256xf32>
      %c0_15 = arith.constant 0 : index
      %c0_16 = arith.constant 0 : index
      %17 = vector.load %arg5[%c0_15, %c0_16] : memref<128x256xf32, #tpu.memory_space<vmem>>, vector<128x256xf32>
      tpu.vector_store %arg5[%c0_15, %c0_16], %16 {strides = array<i32>} : memref<128x256xf32, #tpu.memory_space<vmem>>, vector<128x256xf32>,
    } else {
    }
    return
  }
  func.func @transform_0(%arg0: i32, %arg1: i32) -> (i32, i32) {
    %c0_i32 = arith.constant 0 : i32
    return %arg0, %arg1 : i32, i32
  }
  func.func @transform_1(%arg0: i32, %arg1: i32) -> (i32, i32) {
    %c0_i32 = arith.constant 0 : i32
    %c0_i32_0 = arith.constant 0 : i32
    return %arg1, %c0_i32 : i32, i32
  }
  func.func @transform_2(%arg0: i32, %arg1: i32) -> (i32, i32) {
    %c0_i32 = arith.constant 0 : i32
    %c0_i32_0 = arith.constant 0 : i32
    %c0_i32_1 = arith.constant 0 : i32
    return %c0_i32, %c0_i32_0 : i32, i32
  }
  func.func @transform_3(%arg0: i32, %arg1: i32) -> (i32, i32) {
    %c0_i32 = arith.constant 0 : i32
    %c0_i32_0 = arith.constant 0 : i32
    return %arg0, %c0_i32 : i32, i32
  }
}

</mosaic_0001>

<bundles_post_ra>
// kernel: tpu_custom_call.1
= control target key start
LH: loop header
LB: loop body
LE: loop exit
PB: predicated region body
PF: predicated region fallthrough
CT: control target
= control target key end

     0   :  { %8 = vsyncpa [#allocation4], 0  ;;  %s1773_s0 = inlined_call_operand.hbm [shape: f32[256,256], index: 0, kind: input, shape index: {}]   ;;  %s1774_s1 = inlined_call_operand.hbm [shape: bf16[256,128], index: 1, kind: input, shape index: {}]   ;;  %s1775_s2 = inlined_call_operand.hbm [shape: bf16[128,256], index: 2, kind: input, shape index: {}]   ;;  %s1776_s3 = inlined_call_operand.hbm [shape: f32[256,256], index: 3, kind: output, shape index: {}]  }
   0x1   :  { %10 = vsyncpa [#allocation4 + $0x1], 0 }
   0x2   :  { %11 = vsyncpa [#allocation7], 0 }
   0x3   :  { %12 = vsyncpa [#allocation5], 0 }
   0x4   :  { %14 = vsyncpa [#allocation5 + $0x1], 0  ;;  %s1437_s12 = smov 0   ;;  %s1439_s13 = smov 0  }
   0x5   :  { %s1441_s14 = smov 0   ;;  %s1443_s15 = smov 0  }
   0x6   :  { %s1445_s16 = smov 0   ;;  %s1447_s17 = smov 0  }
   0x7 LB: > { %s977_s18 = sadd.s32 4294967295, %s1402_s17   ;;  %s978_s19 = sadd.s32 4294967294, %s1402_s17   ;;  %s1402_s17 = sphi %s1447_s17, %s20_s17   ;;  %s1398_s16 = sphi %s1445_s16, %s1798_s16   ;;  %s1394_s15 = sphi %s1443_s15, %s1797_s15   ;;  %s1390_s14 = sphi %s1441_s14, %s1796_s14   ;;  %s1386_s13 = sphi %s1439_s13, %s1795_s13   ;;  %s1382_s12 = sphi %s1437_s12, %s1794_s12  }
   0x8   : > { %p54_p0 = scmp.ne.s32.totalorder %s1386_s13, %s1382_s12  ;;  %p1471_p1 = scmp.eq.s32.totalorder %s977_s18, 0 }
   0x9   : > { %p1475_p2 = scmp.eq.s32.totalorder %s977_s18, 1  ;;  %p131_p3 = scmp.eq.s32.totalorder %s978_s19, 1 }
   0xa   : > { %s1781_s20 = scalar_select %p1471_p1, 1, 0 }
   0xb   : > { %p1481_p4 = por %p1471_p1, %p54_p0  ;;  %p979_p5 = scmp.ge.s32.totalorder %s1402_s17, 1 }
   0xc   : > { %p1486_p6 = por %p131_p3, %p54_p0  ;;  %p138_p7 = scmp.lt.s32.totalorder %s1402_s17, 3 }
   0xd   : > { %s1783_s22 = scalar_select %p1481_p4, 1, 0 }
   0xe   : > { %s1784_s23 = scalar_select %p1486_p6, 1, 0 }
   0xf   : > { %p1491_p8 = pnand %p979_p5, %p138_p7  ;;  %s1404_s25 = smov [#allocation6]  }
  0x10   : > { %s153_s26 = sshll.u32 %s1404_s25, 4  ;;  %s1405_s28 = smov [#allocation8]   ;;  %s1495_s26 = int_to_ptr.vmem [resolvable:$true] %s153_s26 }
  0x11   : > { %p1110_p9 = pneg %p1491_p8  ;;  %s166_s29 = sshll.u32 %s1405_s28, 4  ;;  %s1506_s29 = int_to_ptr.vmem [resolvable:$true] %s166_s29 }
  0x12   : > { %s1230_s5 = scalar_lea.hbm %s1774_s1, 2048 }
  0x13   : > { %p1502_p11 = pnand %p1110_p9, %p1471_p1  ;;  %p1231_p12 = scmp.ne.s32.totalorder %s1774_s1, %s1230_s5 }
  0x14   : > { %p1237_p5 = scmp.lt.u32.totalorder %s1230_s5, %s1774_s1 }
  0x15   : > { %p1232_p13 = pneg %p1502_p11 }
  0x17   : > { %p1233_p0 = pnand %p1232_p13, %p1231_p12 }
  0x19   : > { %p1234_p3 = pneg %p1233_p0 }
  0x1b   : > { %p1239_p7 = pnand %p1237_p5, %p1234_p3 }
  0x1d   : > { %1242 = shalt.err (!%p1239_p7)
}
  0x1e   : > { %s1243_s10 = scalar_lea.vmem %s1495_s26, 2048  ;;  %p1251_p1 = scmp.lt.s32.totalorder %s1495_s26, %s1495_s26 }
  0x1f   : > { %p1244_p9 = scmp.ne.s32.totalorder %s1495_s26, %s1243_s10  ;;  %p1252_p12 = scmp.lt.s32.totalorder %s1243_s10, %s1243_s10 }
  0x21   : > { %p1246_p10 = pnand %p1244_p9, %p1232_p13  ;;  %p1253_p0 = por %p1252_p12, %p1251_p1 }
  0x23   : > { %p1247_p6 = pneg %p1246_p10 }
  0x25   : > { %p1254_p4 = pnand %p1253_p0, %p1247_p6 }
  0x27   : > { %1257 = shalt.err (!%p1254_p4)
}
  0x28   : > { %s1406_s11 = smov 64   ;;  %s1407_s18 = smov 4  }
  0x29   : > { %1113 = dma.hbm_to_vmem [thread:$0]  (!%p1502_p11), %s1774_s1, 2048, %s1495_s26, [#allocation7], %s1406_s11, %s1406_s11, %s1407_s18  }
  0x2a   : > { %s1258_s4 = scalar_lea.hbm %s1775_s2, 2048 }
  0x2b   : > { %p1259_p1 = scmp.ne.s32.totalorder %s1775_s2, %s1258_s4  ;;  %p1265_p10 = scmp.lt.u32.totalorder %s1258_s4, %s1775_s2 }
  0x2d   : > { %p1261_p4 = pnand %p1259_p1, %p1232_p13 }
  0x2f   : > { %p1262_p6 = pneg %p1261_p4 }
  0x31   : > { %p1267_p3 = pnand %p1265_p10, %p1262_p6 }
  0x33   : > { %1270 = shalt.err (!%p1267_p3)
}
  0x34   : > { %s1271_s26 = scalar_lea.vmem %s1506_s29, 2048  ;;  %p1279_p12 = scmp.lt.s32.totalorder %s1506_s29, %s1506_s29 }
  0x35   : > { %p1272_p5 = scmp.ne.s32.totalorder %s1506_s29, %s1271_s26  ;;  %p1280_p0 = scmp.lt.s32.totalorder %s1271_s26, %s1271_s26 }
  0x37   : > { %p1274_p7 = pnand %p1272_p5, %p1232_p13  ;;  %p1281_p1 = por %p1280_p0, %p1279_p12 }
  0x39   : > { %p1275_p9 = pneg %p1274_p7 }
  0x3b   : > { %p1282_p4 = pnand %p1281_p1, %p1275_p9 }
  0x3d   : > { %1285 = shalt.err (!%p1282_p4)
}
  0x3e   : > { %s1408_s9 = smov 128   ;;  %s1409_s10 = smov 8  }
  0x3f   : > { %1116 = dma.hbm_to_vmem [thread:$0]  (!%p1502_p11), %s1775_s2, 2048, %s1506_s29, [#allocation7], %s1408_s9, %s1408_s9, %s1409_s10  }
  0x40   : > { %s32_s19 = sadd.s32 1, %s1398_s16  ;;  %s41_s25 = sadd.s32 1, %s1390_s14 }
  0x41   : > { %p34_p13 = scmp.ge.s32.totalorder %s32_s19, 2  ;;  %p48_p6 = scmp.ne.s32.totalorder %s1390_s14, %s1386_s13 }
  0x42   : > { %p49_p10 = scmp.eq.s32.totalorder %s1402_s17, 0  ;;  %p1127_p3 = scmp.lt.s32.totalorder %s1402_s17, 2 }
  0x43   : > { %s1800_s19 = smov (%p34_p13, %s32_s19), 0  ;;  %p1570_p7 = por %p1475_p2, %p48_p6 }
  0x44   : > { %p50_p5 = por %p49_p10, %p48_p6  ;;  %s36_s27 = ssub.s32 %s1398_s16, %s1800_s19 }
  0x45   : > { %s1787_s28 = scalar_select %p1570_p7, 1, 0 }
  0x46   : > { %s180_s30 = sand.u32 1, %s1390_s14   ;;  %p39_p9 = scmp.eq.s32.totalorder %s36_s27, 0 }
  0x47   : > { %s983_s29 = sshll.u32 %s180_s30, 8  ;;  %s1031_s4 = sshll.u32 %s1398_s16, 12 }
  0x48   : > { %s1579_s5 = scalar_select %p39_p9, %s1390_s14, %s41_s25  }
  0x49   : > { %s1584_s8 = scalar_lea.hbm %s1773_s0, %s1031_s4  ;;  %s184_s21 = scalar_lea.vmem [#allocation3], %s983_s29 }
  0x4a   : > { %s194_s26 = sshll.u32 %s184_s21, 4  ;;  %p1588_p2 = pnand %p1127_p3, %p50_p5  ;;  %s1592_s26 = int_to_ptr.vmem [resolvable:$true] %s194_s26 }
  0x4b   : > { %s1594_s10 = scalar_lea.sflag [#allocation4], %s180_s30  ;;  %s1286_s11 = scalar_lea.hbm %s1584_s8, 4096 }
  0x4c   : > { %p1287_p11 = scmp.ne.s32.totalorder %s1584_s8, %s1286_s11  ;;  %p1288_p12 = pneg %p1588_p2 }
  0x4d   : > { %s1291_s27 = scalar_lea.hbm %s1773_s0, 8192  ;;  %p1292_p4 = scmp.lt.u32.totalorder %s1584_s8, %s1773_s0 }
  0x4e   : > { %p1289_p0 = pnand %p1288_p12, %p1287_p11  ;;  %p1293_p13 = scmp.lt.u32.totalorder %s1291_s27, %s1286_s11 }
  0x4f   : > { %p1295_p10 = scmp.lt.u32.totalorder %s1286_s11, %s1584_s8 }
  0x50   : > { %p1290_p1 = pneg %p1289_p0  ;;  %p1294_p6 = por %p1293_p13, %p1292_p4 }
  0x52   : > { %p1296_p3 = por %p1295_p10, %p1294_p6 }
  0x54   : > { %p1297_p5 = pnand %p1296_p3, %p1290_p1 }
  0x56   : > { %1300 = shalt.err (!%p1297_p5)
}
  0x57   : > { %s1301_s30 = scalar_lea.vmem %s1592_s26, 4096  ;;  %s1410_s6 = smov [#allocation3]  }
  0x58   : > { %p1302_p9 = scmp.ne.s32.totalorder %s1592_s26, %s1301_s30  ;;  %s1306_s7 = sshll.u32 %s1410_s6, 4  ;;  %s1307_s7 = int_to_ptr.vmem [resolvable:$false] %s1306_s7 }
  0x59   : > { %s1308_s21 = scalar_lea.vmem %s1307_s7, 8192  ;;  %p1309_p7 = scmp.lt.s32.totalorder %s1592_s26, %s1307_s7 }
  0x5a   : > { %p1304_p11 = pnand %p1302_p9, %p1288_p12  ;;  %p1310_p4 = scmp.lt.s32.totalorder %s1308_s21, %s1301_s30 }
  0x5c   : > { %p1305_p0 = pneg %p1304_p11  ;;  %p1311_p13 = por %p1310_p4, %p1309_p7 }
  0x5e   : > { %p1312_p6 = pnand %p1311_p13, %p1305_p0 }
  0x60   : > { %1315 = shalt.err (!%p1312_p6)
}
  0x61   : > { %s1411_s11 = smov 256   ;;  %s1412_s18 = smov 16  }
  0x62   : > { %1120 = dma.hbm_to_vmem [thread:$0]  (!%p1588_p2), %s1584_s8, 4096, %s1592_s26, %s1594_s10, %s1411_s11, %s1411_s11, %s1412_s18  }
  0x63   : > { %206 = sbr.rel (%p1491_p8) target bundleno = 648 (0x288), region = 32  ;;  %s1625_s25 = sand.u32 (!%p1491_p8), 1, %s1386_s13  }
  0x64   : > { %s988_s27 = sshll.u32 (!%p1491_p8), %s1625_s25, 8  ;;  %s209_s29 = scalar_lea.sflag (!%p1491_p8), [#allocation4], %s1625_s25 }
  0x65   : > { %s1631_s4 = scalar_lea.vmem (!%p1491_p8), [#allocation3], %s988_s27  ;;  %p1789_p7 = scmp.ne.s32.totalorder (!%p1491_p8), %s1783_s22, 0 }
  0x6a   : > { %1369 = dma.done.wait (%p1789_p7), %s209_s29, 4096  }
  0x6b   : > { %1371 = vsyncadd (%p1789_p7), %s209_s29, 4294963200  ;;  %p1790_p2 = scmp.ne.s32.totalorder %s1781_s20, 0 }
  0x6d   : > { %1373 = dma.done.wait (%p1790_p2), [#allocation7], 4096  }
  0x6e   : > { %1375 = vsyncadd (%p1790_p2), [#allocation7], 4294963200  ;;  %v1190_v0 = vld [vmem:[#allocation6 + $0x40] sm:$0xff]   ;;  %v1192_v2 = vld [vmem:[#allocation6 + $0x48] sm:$0xff]   ;;  %s1683_s20 = scalar_lea.vmem [#allocation9], %s988_s27  ;;  %s1033_s22 = sshll.u32 %s1394_s15, 12 }
  0x6f   : > { %v1191_v1 = vld [vmem:[#allocation6] sm:$0xff]   ;;  %1034 = vmatprep.subr.bf16.mxu0 %v1190_v0  ;;  %v1193_v3 = vld [vmem:[#allocation6 + $0x8] sm:$0xff]   ;;  %v1194_v4 = vld [vmem:[#allocation6 + $0x50] sm:$0xff]   ;;  %s872_s24 = sshll.u32 %s1683_s20, 4  ;;  %s1719_s9 = scalar_lea.hbm %s1776_s3, %s1033_s22  ;;  %s1721_s24 = int_to_ptr.vmem [resolvable:$true] %s872_s24 }
  0x70   : > { %1035 = vmatpush3.bf16.msra.mxu0 %v1191_v1  ;;  %v1195_v5 = vld [vmem:[#allocation6 + $0x10] sm:$0xff]   ;;  %v1196_v6 = vld [vmem:[#allocation6 + $0x58] sm:$0xff]   ;;  %v1198_v8 = vld [vmem:[#allocation6 + $0x60] sm:$0xff]   ;;  %s858_s15 = scalar_lea.sflag [#allocation5], %s1625_s25  ;;  %s1316_s10 = scalar_lea.vmem %s1721_s24, 4096 }
  0x71   : > { %1036 = vmatprep.subr.bf16.mxu0 %v1192_v2  ;;  %v1197_v7 = vld [vmem:[#allocation6 + $0x18] sm:$0xff]   ;;  %v1199_v9 = vld [vmem:[#allocation6 + $0x20] sm:$0xff]   ;;  %v1200_v10 = vld [vmem:[#allocation6 + $0x68] sm:$0xff]   ;;  %p1317_p8 = scmp.ne.s32.totalorder %s1721_s24, %s1316_s10  ;;  %p1791_p12 = scmp.ne.s32.totalorder %s1787_s28, 0 }
  0x72   : > { %v269_v11 = vld [vmem:[%s1631_s4 + $0x8] sm:$0xff]  ;;  %v271_v12 = vld [vmem:[%s1631_s4 + $0x18] sm:$0xff]  ;;  %v1202_v15 = vld [vmem:[#allocation6 + $0x70] sm:$0xff]   ;;  %s1414_s30 = smov [#allocation9]  }
  0x73   : > { %v301_v13 = vpack.c.bf16 %v271_v12, %v269_v11  ;;  %v1201_v14 = vld [vmem:[#allocation6 + $0x28] sm:$0xff]   ;;  %v1203_v16 = vld [vmem:[#allocation6 + $0x30] sm:$0xff]   ;;  %v1204_v17 = vld [vmem:[#allocation6 + $0x78] sm:$0xff]   ;;  %p1318_p1 = pnand %p1317_p8, %p1791_p12  ;;  %s1320_s6 = sshll.u32 %s1414_s30, 4  ;;  %s1321_s6 = int_to_ptr.vmem [resolvable:$false] %s1320_s6 }
  0x74   : > { %1037 = vmatpush3.bf16.msra.mxu0 %v1193_v3  ;;  %v1205_v18 = vld [vmem:[#allocation6 + $0x38] sm:$0xff]   ;;  %v268_v19 = vld [vmem:[%s1631_s4] sm:$0xff]  ;;  %v270_v20 = vld [vmem:[%s1631_s4 + $0x10] sm:$0xff]  ;;  %s1322_s7 = scalar_lea.vmem %s1321_s6, 8192  ;;  %p1323_p3 = scmp.lt.s32.totalorder %s1721_s24, %s1321_s6 }
  0x75   : > { %1038 = vmatprep.subr.bf16.mxu0 %v1194_v4  ;;  %492 = vmatprep.mubr.bf16.mxu0 %v301_v13  ;;  %v273_v21 = vld [vmem:[%s1631_s4 + $0x28] sm:$0xff]  ;;  %v275_v22 = vld [vmem:[%s1631_s4 + $0x38] sm:$0xff]  ;;  %v300_v26 = vpack.c.bf16 %v270_v20, %v268_v19  ;;  %v272_v30 = vld [vmem:[%s1631_s4 + $0x20] sm:$0xff]  ;;  %p1319_p10 = pneg %p1318_p1  ;;  %p1324_p5 = scmp.lt.s32.totalorder %s1322_s7, %s1316_s10 }
  0x76   : > { %v1206_v23 = vld [vmem:[#allocation8 + $0x4] ss:$8 sps:$4 sm:$0xff]   ;;  %v1208_v24 = vld [vmem:[#allocation8] ss:$8 sps:$4 sm:$0xff]   ;;  %v1209_v25 = vld [vmem:[#allocation8 + $0x14] ss:$8 sps:$4 sm:$0xff]   ;;  %v303_v28 = vpack.c.bf16 %v275_v22, %v273_v21 }
  0x77   : > { %712 = vmatprep.subr.bf16.mxu1 %v1206_v23  ;;  %v1211_v27 = vld [vmem:[#allocation8 + $0x10] ss:$8 sps:$4 sm:$0xff]   ;;  %v1212_v29 = vld [vmem:[#allocation8 + $0x24] ss:$8 sps:$4 sm:$0xff]   ;;  %v1214_v32 = vld [vmem:[#allocation8 + $0x20] ss:$8 sps:$4 sm:$0xff]   ;;  %p1325_p9 = por %p1324_p5, %p1323_p3 }
  0x78   : > { %1039 = vmatpush3.bf16.msra.mxu0 %v1195_v5  ;;  %713 = vmatpush1.bf16.msra.mxu1 %v1208_v24  ;;  %v274_v31 = vld [vmem:[%s1631_s4 + $0x30] sm:$0xff]  ;;  %v277_v34 = vld [vmem:[%s1631_s4 + $0x48] sm:$0xff]  ;;  %v279_v35 = vld [vmem:[%s1631_s4 + $0x58] sm:$0xff] }
  0x79   : > { %1040 = vmatprep.subr.bf16.mxu0 %v1196_v6  ;;  %714 = vmatprep.subr.bf16.mxu1 %v1209_v25  ;;  %v1215_v33 = vld [vmem:[#allocation8 + $0x34] ss:$8 sps:$4 sm:$0xff]   ;;  %v302_v36 = vpack.c.bf16 %v274_v31, %v272_v30  ;;  %v1217_v37 = vld [vmem:[#allocation8 + $0x30] ss:$8 sps:$4 sm:$0xff]   ;;  %v305_v38 = vpack.c.bf16 %v279_v35, %v277_v34  ;;  %v1218_v39 = vld [vmem:[#allocation8 + $0x44] ss:$8 sps:$4 sm:$0xff]   ;;  %p1326_p11 = pnand %p1325_p9, %p1319_p10 }
  0x7a   : > { %v1220_v40 = vld [vmem:[#allocation8 + $0x40] ss:$8 sps:$4 sm:$0xff]   ;;  %v278_v42 = vld [vmem:[%s1631_s4 + $0x50] sm:$0xff]  ;;  %v283_v45 = vld [vmem:[%s1631_s4 + $0x78] sm:$0xff] }
  0x7b   : > { %v276_v41 = vld [vmem:[%s1631_s4 + $0x40] sm:$0xff]  ;;  %v1221_v43 = vld [vmem:[#allocation8 + $0x54] ss:$8 sps:$4 sm:$0xff]   ;;  %v281_v44 = vld [vmem:[%s1631_s4 + $0x68] sm:$0xff] }
  0x7c   : > { %1041 = vmatpush3.bf16.msra.mxu0 %v1197_v7  ;;  %715 = vmatpush1.bf16.msra.mxu1 %v1211_v27  ;;  %v304_v46 = vpack.c.bf16 %v278_v42, %v276_v41  ;;  %v1223_v47 = vld [vmem:[#allocation8 + $0x50] ss:$8 sps:$4 sm:$0xff]   ;;  %v307_v48 = vpack.c.bf16 %v283_v45, %v281_v44  ;;  %v280_v49 = vld [vmem:[%s1631_s4 + $0x60] sm:$0xff]  ;;  %v285_v51 = vld [vmem:[%s1631_s4 + $0x88] sm:$0xff] }
  0x7d   : > { %1042 = vmatprep.subr.bf16.mxu0 %v1198_v8  ;;  %716 = vmatprep.subr.bf16.mxu1 %v1212_v29  ;;  %v282_v50 = vld [vmem:[%s1631_s4 + $0x70] sm:$0xff]  ;;  %v287_v52 = vld [vmem:[%s1631_s4 + $0x98] sm:$0xff]  ;;  %v284_v55 = vld [vmem:[%s1631_s4 + $0x80] sm:$0xff] }
  0x7e   : > { %v306_v53 = vpack.c.bf16 %v282_v50, %v280_v49  ;;  %v309_v54 = vpack.c.bf16 %v287_v52, %v285_v51  ;;  %v286_v56 = vld [vmem:[%s1631_s4 + $0x90] sm:$0xff]  ;;  %v289_v57 = vld [vmem:[%s1631_s4 + $0xa8] sm:$0xff]  ;;  %v291_v58 = vld [vmem:[%s1631_s4 + $0xb8] sm:$0xff] }
  0x7f   : > { %v308_v59 = vpack.c.bf16 %v286_v56, %v284_v55  ;;  %v311_v60 = vpack.c.bf16 %v291_v58, %v289_v57  ;;  %v288_v61 = vld [vmem:[%s1631_s4 + $0xa0] sm:$0xff]  ;;  %v290_v62 = vld [vmem:[%s1631_s4 + $0xb0] sm:$0xff]  ;;  %v293_v63 = vld [vmem:[%s1631_s4 + $0xc8] sm:$0xff] }
  0x80   : > { %1043 = vmatpush3.bf16.msra.mxu0 %v1199_v9  ;;  %717 = vmatpush1.bf16.msra.mxu1 %v1214_v32  ;;  %v295_v0 = vld [vmem:[%s1631_s4 + $0xd8] sm:$0xff]  ;;  %v310_v1 = vpack.c.bf16 %v290_v62, %v288_v61  ;;  %v292_v3 = vld [vmem:[%s1631_s4 + $0xc0] sm:$0xff]  ;;  %v294_v4 = vld [vmem:[%s1631_s4 + $0xd0] sm:$0xff] }
  0x81   : > { %1044 = vmatprep.subr.bf16.mxu0 %v1200_v10  ;;  %718 = vmatprep.subr.bf16.mxu1 %v1215_v33  ;;  %v313_v2 = vpack.c.bf16 %v295_v0, %v293_v63  ;;  %v297_v5 = vld [vmem:[%s1631_s4 + $0xe8] sm:$0xff]  ;;  %v299_v6 = vld [vmem:[%s1631_s4 + $0xf8] sm:$0xff]  ;;  %v312_v7 = vpack.c.bf16 %v294_v4, %v292_v3  ;;  %v296_v9 = vld [vmem:[%s1631_s4 + $0xe0] sm:$0xff] }
  0x82   : > { %v315_v8 = vpack.c.bf16 %v299_v6, %v297_v5  ;;  %v298_v10 = vld [vmem:[%s1631_s4 + $0xf0] sm:$0xff]  ;;  %v1224_v12 = vld [vmem:[#allocation8 + $0x64] ss:$8 sps:$4 sm:$0xff]   ;;  %v1226_v13 = vld [vmem:[#allocation8 + $0x60] ss:$8 sps:$4 sm:$0xff]  }
  0x83   : > { %v314_v11 = vpack.c.bf16 %v298_v10, %v296_v9 }
  0x84   : > { %1045 = vmatpush3.bf16.msra.mxu0 %v1201_v14  ;;  %719 = vmatpush1.bf16.msra.mxu1 %v1217_v37  ;;  %v1227_v14 = vld [vmem:[#allocation8 + $0x74] ss:$8 sps:$4 sm:$0xff]  }
  0x85   : > { %1046 = vmatprep.subr.bf16.mxu0 %v1202_v15  ;;  %720 = vmatprep.subr.bf16.mxu1 %v1218_v39  ;;  %v1229_v15 = vld [vmem:[#allocation8 + $0x70] ss:$8 sps:$4 sm:$0xff]  }
  0x88   : > { %1047 = vmatpush3.bf16.msra.mxu0 %v1203_v16  ;;  %721 = vmatpush1.bf16.msra.mxu1 %v1220_v40  ;;  %v1413_v16 = vmov 0  }
  0x89   : > { %1048 = vmatprep.subr.bf16.mxu0 %v1204_v17  ;;  %722 = vmatprep.subr.bf16.mxu1 %v1221_v43 }
  0x8a   : > { %744 = vmatprep.mubr.bf16.mxu1 %v1413_v16 }
  0x8c   : > { %1049 = vmatpush3.bf16.msra.mxu0 %v1205_v18  ;;  %723 = vmatpush1.bf16.msra.mxu1 %v1223_v47 }
  0x8d   : > { %724 = vmatprep.subr.bf16.mxu1 %v1224_v12 }
  0x8f   : > { %493 = vmatmul.mubr.bf16.vlgmr.msra.gmra.mrb[0].mxu0 %v300_v26 }
  0x90   : > { %500 = vmatprep.mubr.bf16.mxu0 %v303_v28  ;;  %725 = vmatpush1.bf16.msra.mxu1 %v1226_v13 }
  0x91   : > { %726 = vmatprep.subr.bf16.mxu1 %v1227_v14 }
  0x94   : > { %727 = vmatpush1.bf16.msra.mxu1 %v1229_v15 }
  0x97   : > { %501 = vmatmul.mubr.bf16.gmra.mrb[4].mxu0 %v302_v36 }
  0x98   : > { %508 = vmatprep.mubr.bf16.mxu0 %v305_v38 }
  0x9f   : > { %509 = vmatmul.mubr.bf16.gmra.mrb[8].mxu0 %v304_v46 }
  0xa0   : > { %516 = vmatprep.mubr.bf16.mxu0 %v307_v48 }
  0xa7   : > { %517 = vmatmul.mubr.bf16.gmra.mrb[12].mxu0 %v306_v53 }
  0xa8   : > { %524 = vmatprep.mubr.bf16.mxu0 %v309_v54 }
  0xaf   : > { %525 = vmatmul.mubr.bf16.gmra.mrb[16].mxu0 %v308_v59 }
  0xb0   : > { %532 = vmatprep.mubr.bf16.mxu0 %v311_v60 }
  0xb7   : > { %533 = vmatmul.mubr.bf16.gmra.mrb[20].mxu0 %v310_v1 }
  0xb8   : > { %540 = vmatprep.mubr.bf16.mxu0 %v313_v2 }
  0xbf   : > { %541 = vmatmul.mubr.bf16.gmra.mrb[24].mxu0 %v312_v7 }
  0xc0   : > { %548 = vmatprep.mubr.bf16.mxu0 %v315_v8 }
  0xc7   : > { %549 = vmatmul.mubr.bf16.gmra.mrb[28].mxu0 %v314_v11 }
 0x162   : > { %v1050_v17 = vpop.f32.mrb[0].mxu0 }
 0x163   : > { %v1051_v18 = vpop.f32.mrb[1].mxu0 }
 0x164   : > { %v1052_v19 = vadd.f32 %v1051_v18, %v1050_v17  ;;  %v1053_v20 = vpop.f32.mrb[2].mxu0 }
 0x165   : > { %v1054_v21 = vpop.f32.mrb[3].mxu0 }
 0x166   : > { %v1055_v22 = vadd.f32 %v1054_v21, %v1053_v20 }
 0x168   : > { %v608_v23 = vpack.c.bf16 %v1055_v22, %v1052_v19 }
 0x16a   : > { %v1056_v24 = vpop.f32.mrb[4].mxu0  ;;  %745 = vmatmul.mubr.bf16.vlgmr.msra.gmra.mrb[0].mxu1 %v608_v23 }
 0x16b   : > { %v1057_v25 = vpop.f32.mrb[5].mxu0  ;;  %754 = vmatprep.mubr.bf16.mxu1 %v1413_v16 }
 0x16c   : > { %v1058_v26 = vadd.f32 %v1057_v25, %v1056_v24  ;;  %v1059_v27 = vpop.f32.mrb[6].mxu0 }
 0x16d   : > { %v1060_v28 = vpop.f32.mrb[7].mxu0 }
 0x16e   : > { %v1061_v29 = vadd.f32 %v1060_v28, %v1059_v27 }
 0x170   : > { %v609_v30 = vpack.c.bf16 %v1061_v29, %v1058_v26 }
 0x172   : > { %v1062_v31 = vpop.f32.mrb[8].mxu0  ;;  %755 = vmatmul.mubr.bf16.gmra.mrb[4].mxu1 %v609_v30 }
 0x173   : > { %v1063_v32 = vpop.f32.mrb[9].mxu0  ;;  %764 = vmatprep.mubr.bf16.mxu1 %v1413_v16 }
 0x174   : > { %v1064_v33 = vadd.f32 %v1063_v32, %v1062_v31  ;;  %v1065_v34 = vpop.f32.mrb[10].mxu0 }
 0x175   : > { %v1066_v35 = vpop.f32.mrb[11].mxu0 }
 0x176   : > { %v1067_v36 = vadd.f32 %v1066_v35, %v1065_v34 }
 0x178   : > { %v610_v37 = vpack.c.bf16 %v1067_v36, %v1064_v33 }
 0x17a   : > { %v1068_v38 = vpop.f32.mrb[12].mxu0  ;;  %765 = vmatmul.mubr.bf16.gmra.mrb[8].mxu1 %v610_v37 }
 0x17b   : > { %v1069_v39 = vpop.f32.mrb[13].mxu0  ;;  %774 = vmatprep.mubr.bf16.mxu1 %v1413_v16 }
 0x17c   : > { %v1070_v40 = vadd.f32 %v1069_v39, %v1068_v38  ;;  %v1071_v41 = vpop.f32.mrb[14].mxu0 }
 0x17d   : > { %v1072_v42 = vpop.f32.mrb[15].mxu0 }
 0x17e   : > { %v1073_v43 = vadd.f32 %v1072_v42, %v1071_v41 }
 0x180   : > { %v611_v44 = vpack.c.bf16 %v1073_v43, %v1070_v40 }
 0x182   : > { %v1074_v45 = vpop.f32.mrb[16].mxu0  ;;  %775 = vmatmul.mubr.bf16.gmra.mrb[12].mxu1 %v611_v44 }
 0x183   : > { %v1075_v46 = vpop.f32.mrb[17].mxu0  ;;  %784 = vmatprep.mubr.bf16.mxu1 %v1413_v16 }
 0x184   : > { %v1076_v47 = vadd.f32 %v1075_v46, %v1074_v45  ;;  %v1077_v48 = vpop.f32.mrb[18].mxu0 }
 0x185   : > { %v1078_v49 = vpop.f32.mrb[19].mxu0 }
 0x186   : > { %v1079_v50 = vadd.f32 %v1078_v49, %v1077_v48 }
 0x188   : > { %v612_v51 = vpack.c.bf16 %v1079_v50, %v1076_v47 }
 0x18a   : > { %v1080_v52 = vpop.f32.mrb[20].mxu0  ;;  %785 = vmatmul.mubr.bf16.gmra.mrb[16].mxu1 %v612_v51 }
 0x18b   : > { %v1081_v53 = vpop.f32.mrb[21].mxu0  ;;  %794 = vmatprep.mubr.bf16.mxu1 %v1413_v16 }
 0x18c   : > { %v1082_v54 = vadd.f32 %v1081_v53, %v1080_v52  ;;  %v1083_v55 = vpop.f32.mrb[22].mxu0 }
 0x18d   : > { %v1084_v56 = vpop.f32.mrb[23].mxu0 }
 0x18e   : > { %v1085_v57 = vadd.f32 %v1084_v56, %v1083_v55 }
 0x190   : > { %v613_v58 = vpack.c.bf16 %v1085_v57, %v1082_v54 }
 0x192   : > { %v1086_v59 = vpop.f32.mrb[24].mxu0  ;;  %795 = vmatmul.mubr.bf16.gmra.mrb[20].mxu1 %v613_v58 }
 0x193   : > { %v1087_v60 = vpop.f32.mrb[25].mxu0  ;;  %804 = vmatprep.mubr.bf16.mxu1 %v1413_v16 }
 0x194   : > { %v1088_v61 = vadd.f32 %v1087_v60, %v1086_v59  ;;  %v1089_v62 = vpop.f32.mrb[26].mxu0 }
 0x195   : > { %v1090_v63 = vpop.f32.mrb[27].mxu0 }
 0x196   : > { %v1091_v0 = vadd.f32 %v1090_v63, %v1089_v62 }
 0x198   : > { %v614_v1 = vpack.c.bf16 %v1091_v0, %v1088_v61 }
 0x19a   : > { %v1092_v2 = vpop.f32.mrb[28].mxu0  ;;  %805 = vmatmul.mubr.bf16.gmra.mrb[24].mxu1 %v614_v1 }
 0x19b   : > { %v1093_v3 = vpop.f32.mrb[29].mxu0  ;;  %814 = vmatprep.mubr.bf16.mxu1 %v1413_v16 }
 0x19c   : > { %v1094_v4 = vadd.f32 %v1093_v3, %v1092_v2  ;;  %v1095_v5 = vpop.f32.mrb[30].mxu0 }
 0x19d   : > { %v1096_v6 = vpop.f32.mrb[31].mxu0 }
 0x19e   : > { %v1097_v7 = vadd.f32 %v1096_v6, %v1095_v5 }
 0x1a0   : > { %v615_v8 = vpack.c.bf16 %v1097_v7, %v1094_v4 }
 0x1a2   : > { %815 = vmatmul.mubr.bf16.gmra.mrb[28].mxu1 %v615_v8 }
 0x23d   : > { %v746_v9 = vpop.f32.mrb[0].mxu1 }
 0x23e   : > { %825 = vst [vmem:[%s1683_s20] sm:$0xff] %v746_v9  ;;  %v748_v10 = vpop.f32.mrb[1].mxu1 }
 0x23f   : > { %826 = vst [vmem:[%s1683_s20 + $0x8] sm:$0xff] %v748_v10  ;;  %v750_v11 = vpop.f32.mrb[2].mxu1 }
 0x240   : > { %827 = vst [vmem:[%s1683_s20 + $0x10] sm:$0xff] %v750_v11  ;;  %v752_v12 = vpop.f32.mrb[3].mxu1 }
 0x241   : > { %828 = vst [vmem:[%s1683_s20 + $0x18] sm:$0xff] %v752_v12 }
 0x245   : > { %v756_v13 = vpop.f32.mrb[4].mxu1 }
 0x246   : > { %829 = vst [vmem:[%s1683_s20 + $0x20] sm:$0xff] %v756_v13  ;;  %v758_v14 = vpop.f32.mrb[5].mxu1 }
 0x247   : > { %830 = vst [vmem:[%s1683_s20 + $0x28] sm:$0xff] %v758_v14  ;;  %v760_v15 = vpop.f32.mrb[6].mxu1 }
 0x248   : > { %831 = vst [vmem:[%s1683_s20 + $0x30] sm:$0xff] %v760_v15  ;;  %v762_v16 = vpop.f32.mrb[7].mxu1 }
 0x249   : > { %832 = vst [vmem:[%s1683_s20 + $0x38] sm:$0xff] %v762_v16 }
 0x24d   : > { %v766_v17 = vpop.f32.mrb[8].mxu1 }
 0x24e   : > { %833 = vst [vmem:[%s1683_s20 + $0x40] sm:$0xff] %v766_v17  ;;  %v768_v18 = vpop.f32.mrb[9].mxu1 }
 0x24f   : > { %834 = vst [vmem:[%s1683_s20 + $0x48] sm:$0xff] %v768_v18  ;;  %v770_v19 = vpop.f32.mrb[10].mxu1 }
 0x250   : > { %835 = vst [vmem:[%s1683_s20 + $0x50] sm:$0xff] %v770_v19  ;;  %v772_v20 = vpop.f32.mrb[11].mxu1 }
 0x251   : > { %836 = vst [vmem:[%s1683_s20 + $0x58] sm:$0xff] %v772_v20 }
 0x255   : > { %v776_v21 = vpop.f32.mrb[12].mxu1 }
 0x256   : > { %837 = vst [vmem:[%s1683_s20 + $0x60] sm:$0xff] %v776_v21  ;;  %v778_v22 = vpop.f32.mrb[13].mxu1 }
 0x257   : > { %838 = vst [vmem:[%s1683_s20 + $0x68] sm:$0xff] %v778_v22  ;;  %v780_v23 = vpop.f32.mrb[14].mxu1 }
 0x258   : > { %839 = vst [vmem:[%s1683_s20 + $0x70] sm:$0xff] %v780_v23  ;;  %v782_v24 = vpop.f32.mrb[15].mxu1 }
 0x259   : > { %840 = vst [vmem:[%s1683_s20 + $0x78] sm:$0xff] %v782_v24 }
 0x25d   : > { %v786_v25 = vpop.f32.mrb[16].mxu1 }
 0x25e   : > { %841 = vst [vmem:[%s1683_s20 + $0x80] sm:$0xff] %v786_v25  ;;  %v788_v26 = vpop.f32.mrb[17].mxu1 }
 0x25f   : > { %842 = vst [vmem:[%s1683_s20 + $0x88] sm:$0xff] %v788_v26  ;;  %v790_v27 = vpop.f32.mrb[18].mxu1 }
 0x260   : > { %843 = vst [vmem:[%s1683_s20 + $0x90] sm:$0xff] %v790_v27  ;;  %v792_v28 = vpop.f32.mrb[19].mxu1 }
 0x261   : > { %844 = vst [vmem:[%s1683_s20 + $0x98] sm:$0xff] %v792_v28 }
 0x265   : > { %v796_v29 = vpop.f32.mrb[20].mxu1 }
 0x266   : > { %845 = vst [vmem:[%s1683_s20 + $0xa0] sm:$0xff] %v796_v29  ;;  %v798_v30 = vpop.f32.mrb[21].mxu1 }
 0x267   : > { %846 = vst [vmem:[%s1683_s20 + $0xa8] sm:$0xff] %v798_v30  ;;  %v800_v31 = vpop.f32.mrb[22].mxu1 }
 0x268   : > { %847 = vst [vmem:[%s1683_s20 + $0xb0] sm:$0xff] %v800_v31  ;;  %v802_v32 = vpop.f32.mrb[23].mxu1 }
 0x269   : > { %848 = vst [vmem:[%s1683_s20 + $0xb8] sm:$0xff] %v802_v32 }
 0x26d   : > { %v806_v33 = vpop.f32.mrb[24].mxu1 }
 0x26e   : > { %849 = vst [vmem:[%s1683_s20 + $0xc0] sm:$0xff] %v806_v33  ;;  %v808_v34 = vpop.f32.mrb[25].mxu1 }
 0x26f   : > { %850 = vst [vmem:[%s1683_s20 + $0xc8] sm:$0xff] %v808_v34  ;;  %v810_v35 = vpop.f32.mrb[26].mxu1 }
 0x270   : > { %851 = vst [vmem:[%s1683_s20 + $0xd0] sm:$0xff] %v810_v35  ;;  %v812_v36 = vpop.f32.mrb[27].mxu1 }
 0x271   : > { %852 = vst [vmem:[%s1683_s20 + $0xd8] sm:$0xff] %v812_v36 }
 0x275   : > { %v816_v37 = vpop.f32.mrb[28].mxu1 }
 0x276   : > { %853 = vst [vmem:[%s1683_s20 + $0xe0] sm:$0xff] %v816_v37  ;;  %v818_v38 = vpop.f32.mrb[29].mxu1 }
 0x277   : > { %854 = vst [vmem:[%s1683_s20 + $0xe8] sm:$0xff] %v818_v38  ;;  %v820_v39 = vpop.f32.mrb[30].mxu1 }
 0x278   : > { %855 = vst [vmem:[%s1683_s20 + $0xf0] sm:$0xff] %v820_v39  ;;  %v822_v40 = vpop.f32.mrb[31].mxu1 }
 0x279   : > { %856 = vst [vmem:[%s1683_s20 + $0xf8] sm:$0xff] %v822_v40 }
 0x27a   : > { %1329 = shalt.err (!%p1326_p11)
}
 0x27b   : > { %s1330_s21 = scalar_lea.hbm %s1719_s9, 4096  ;;  %s1334_s27 = scalar_lea.hbm %s1776_s3, 8192 }
 0x27c   : > { %p1331_p0 = scmp.ne.s32.totalorder %s1719_s9, %s1330_s21  ;;  %p1335_p6 = scmp.lt.u32.totalorder %s1719_s9, %s1776_s3 }
 0x27d   : > { %p1336_p7 = scmp.lt.u32.totalorder %s1334_s27, %s1330_s21  ;;  %p1338_p8 = scmp.lt.u32.totalorder %s1330_s21, %s1719_s9 }
 0x27e   : > { %p1332_p4 = pnand %p1331_p0, %p1791_p12 }
 0x27f   : > { %p1337_p2 = por %p1336_p7, %p1335_p6 }
 0x280   : > { %p1333_p13 = pneg %p1332_p4 }
 0x281   : > { %p1339_p1 = por %p1338_p8, %p1337_p2 }
 0x283   : > { %p1340_p10 = pnand %p1339_p1, %p1333_p13 }
 0x285   : > { %1343 = shalt.err (!%p1340_p10)
}
 0x286   : > { %s1415_s20 = smov 256   ;;  %s1416_s22 = smov 16  }
 0x287   : > { %1108 = dma.vmem_to_hbm [thread:$0]  (%p1791_p12), %s1721_s24, 4096, %s1719_s9, %s858_s15, %s1415_s20, %s1415_s20, %s1416_s22  }
 0x288 PF: > { %s887_s8 = sand.u32 1, %s1382_s12   ;;  %p1792_p3 = scmp.ne.s32.totalorder %s1784_s23, 0 }
 0x289   : > { %p1793_p5 = scmp.ge.s32.totalorder %s1402_s17, 2  ;;  %s888_s26 = scalar_lea.sflag [#allocation5], %s887_s8 }
 0x28b   : > { %p1122_p9 = pnand %p1793_p5, %p1792_p3 }
 0x28d   : > { %1377 = dma.done.wait (!%p1122_p9), %s888_s26, 4096  }
 0x28e   : > { %1379 = vsyncadd (!%p1122_p9), %s888_s26, 4294963200  ;;  %s20_s17 = sadd.s32 1, %s1402_s17   ;;  %s1794_s12 = smov %s1386_s13 }
 0x28f   : > { %p17_p11 = scmp.ge.s32.totalorder %s20_s17, 4   ;;  %s1795_s13 = smov %s1390_s14 }
 0x290   : > { %s1796_s14 = smov %s1579_s5  ;;  %s1797_s15 = smov %s1398_s16 }
 0x291   : > { %s1798_s16 = smov %s1800_s19  ;;  %19 = sbr.rel (!%p17_p11) target bundleno = 7 (0x7), region = 94 }
 0x298   :  { %893 = vsyncpa [#allocation4], 1 }
 0x299   :  { %895 = vsyncpa [#allocation4 + $0x1], 1 }
 0x29a   :  { %896 = vsyncpa [#allocation7], 1 }
 0x29b   :  { %897 = vsyncpa [#allocation5], 1 }
 0x29c   :  { %899 = vsyncpa [#allocation5 + $0x1], 1 }

</bundles_post_ra>
